<compile_context>
chip_gen: v6e
topology: v6e:2x2x1
jax: 0.10.0
libtpu: 0.0.40
codegen_flags: <defaults>
</compile_context>

<pallas_src>
import math
import functools

import jax
import jax.numpy as jnp
from jax.experimental import pallas as pl
from jax.experimental.pallas import tpu as pltpu


# ---------------------------------------------------------------------------
# Small helpers (generation-aware limits, tiling choices)
# ---------------------------------------------------------------------------
def _round_up(x, m):
    return ((x + m - 1) // m) * m


def _vmem_capacity_bytes():
    try:
        info = pltpu.get_tpu_info()
        cap = getattr(info, "vmem_capacity_bytes", None)
        if cap:
            return int(cap)
    except Exception:
        pass
    return 64 << 20  # conservative fallback (v7x per-TC physical VMEM)


def _vmem_limit_bytes(need_bytes):
    # Raise the scoped-VMEM limit above the small defaults, but cap at ~80% of
    # the physical VMEM of the generation we are actually running on.
    cap = max(int(_vmem_capacity_bytes() * 0.8), 16 << 20)
    need = int(need_bytes * 1.5) + (4 << 20)
    return int(min(max(need, 32 << 20), cap))


def _default_tiles():
    # Bigger tiles on v5e/v6e (128 MiB VMEM), tighter on v7x (64 MiB per TC).
    if _vmem_capacity_bytes() >= (96 << 20):
        return 512, 4096
    return 256, 2048


def _pick_tiles(N, want_tm, want_tk):
    # Pad the node count to a multiple of 128 so the adjacency contraction can
    # be K-tiled with lane-aligned (*, 128k) blocks.  When N is already a
    # multiple of 128 no padding copy is made at all.
    Np = _round_up(max(N, 1), 128)
    want_tm = max(8, min(int(want_tm), Np))
    tm = (want_tm // 8) * 8
    while Np % tm != 0:
        tm -= 8
    want_tk = max(128, min(int(want_tk), Np))
    tk = (want_tk // 128) * 128
    while Np % tk != 0:
        tk -= 128
    return Np, tm, tk


def _const_bspec(shape, index_map):
    """BlockSpec for a block whose index never changes: single-buffer it to
    save VMEM; falls back to a default double-buffered spec if pipeline_mode /
    pl.Buffered is unavailable in this JAX version."""
    try:
        return pl.BlockSpec(shape, index_map, pipeline_mode=pl.Buffered(1))
    except Exception:
        return pl.BlockSpec(shape, index_map)


# ---------------------------------------------------------------------------
# Kernel 1: LorentzLinear (nonlin=relu, eval-mode dropout), tiled over rows.
# Emits h1 in `matmul_dtype` (bf16 for the native-MXU aggregation path).
# ---------------------------------------------------------------------------
def lorentz_linear_kernel(x_ref, w_ref, b_ref, h1_ref, *, c, scale_exp, sqrt_c):
    x = x_ref[...].astype(jnp.float32)            # (TM, Dp)
    w = w_ref[...].astype(jnp.float32)            # (Dp, Dp)
    b = b_ref[...].astype(jnp.float32)            # (1, Dp)

    xa = jax.nn.relu(x)
    h = jnp.dot(xa, w, preferred_element_type=jnp.float32) + b   # (TM, Dp)

    h0 = h[:, 0:1]
    time = jax.nn.sigmoid(h0) * scale_exp + (sqrt_c + 0.5)        # (TM, 1)

    # Space-only squared norm: zero the time lane before squaring (avoids the
    # cancellation-prone rowsum(h*h) - h0^2 form).
    col0 = jax.lax.broadcasted_iota(jnp.int32, h.shape, 1) == 0
    h_space = jnp.where(col0, 0.0, h)
    narrow_sq = jnp.maximum(jnp.sum(h_space * h_space, axis=-1, keepdims=True), 1e-8)
    sfac = (time * time - c) / narrow_sq
    mult = jnp.sqrt(jnp.maximum(sfac, 1e-8))                      # (TM, 1)

    h1_ref[...] = jnp.where(col0, time, h * mult).astype(h1_ref.dtype)


# ---------------------------------------------------------------------------
# Kernel 2: LorentzAgg (use_att=False) + skip connection.
# Grid = (row blocks, K blocks); adj (tm, tk) tiles vs h1 (tk, Dp) tiles are
# accumulated into a VMEM f32 scratch; Lorentz normalizations + skip run only
# on the last K step.
# ---------------------------------------------------------------------------
def lorentz_agg_skip_kernel(x_ref, adj_ref, h1_ref, o_ref, acc_ref,
                            *, sqrt_c, inv_sqrt_c):
    k = pl.program_id(1)

    @pl.when(k == 0)
    def _():
        acc_ref[...] = jnp.zeros_like(acc_ref)

    # Native-dtype matmul (bf16 x bf16 -> f32 on the MXU when matmul_dtype=bf16).
    acc_ref[...] += jnp.dot(adj_ref[...], h1_ref[...],
                            preferred_element_type=jnp.float32)

    @pl.when(k == pl.num_programs(1) - 1)
    def _():
        support = acc_ref[...]                                    # (TM, Dp) f32
        x = x_ref[...].astype(jnp.float32)                        # (TM, Dp)
        col0 = jax.lax.broadcasted_iota(jnp.int32, support.shape, 1) == 0

        # <s,s>_L = -s0^2 + sum_{i>0} s_i^2 (space sum via zeroed time lane)
        s0 = support[:, 0:1]
        s_space = jnp.where(col0, 0.0, support)
        lor = jnp.sum(s_space * s_space, axis=-1, keepdims=True) - s0 * s0
        inv_denom = sqrt_c * jax.lax.rsqrt(jnp.maximum(jnp.abs(lor), 1e-8))

        # skip branch (in_dim == out_dim), fused: no separate h1_agg array
        ave = x + support * inv_denom
        a0 = ave[:, 0:1]
        a_space = jnp.where(col0, 0.0, ave)
        lor2 = jnp.sum(a_space * a_space, axis=-1, keepdims=True) - a0 * a0
        inv_denom2 = inv_sqrt_c * jax.lax.rsqrt(jnp.maximum(jnp.abs(lor2), 1e-8))
        o_ref[...] = (ave * inv_denom2).astype(o_ref.dtype)


# ---------------------------------------------------------------------------
# Wrapper
# ---------------------------------------------------------------------------
def skip_layer_forward(x, adj, w, b, *, c=1.0, scale_param=math.log(10.0),
                       block_rows=None, block_k=None, matmul_dtype=jnp.float32):
    """Fused SkipLayer forward.  x:(N,D), adj:(N,N) dense, w:(D,D), b:(1,D).

    `matmul_dtype` is the storage/compute dtype of adj and h1 for the
    aggregation matmul (jnp.float32 for exactness, jnp.bfloat16 for the native
    bf16 MXU path that halves the dominant HBM traffic)."""
    N, D_in = x.shape
    D_out = w.shape[1]
    assert D_in == D_out, "skip branch requires in_dim == out_dim"

    def_tm, def_tk = _default_tiles()
    want_tm = def_tm if block_rows is None else int(block_rows)
    want_tk = def_tk if block_k is None else int(block_k)

    Dp = _round_up(max(D_in, 1), 128)
    Np, tm, tk = _pick_tiles(N, want_tm, want_tk)

    f32 = jnp.float32
    mm_dtype = jnp.dtype(matmul_dtype)

    # x: padded, f32
    if x.shape == (Np, Dp) and x.dtype == f32:
        xp = x
    else:
        xp = jnp.zeros((Np, Dp), f32).at[:N, :D_in].set(x.astype(f32))

    # adj: fold the zero-pad and dtype cast into a single N^2 materialization
    # (or no copy at all when already aligned and the dtype matches).
    if adj.shape == (Np, Np):
        adjp = adj if adj.dtype == mm_dtype else adj.astype(mm_dtype)
    else:
        adjp = jnp.zeros((Np, Np), mm_dtype).at[:N, :N].set(adj.astype(mm_dtype))

    wp = jnp.zeros((Dp, Dp), f32).at[:D_in, :D_out].set(w.astype(f32))
    bp = jnp.zeros((1, Dp), f32).at[:, :D_out].set(b.astype(f32).reshape(1, -1))

    n_row = Np // tm
    n_k = Np // tk
    item = mm_dtype.itemsize

    # ---- kernel 1: LorentzLinear over all nodes -> h1 (Np, Dp) -------------
    lin_kernel = functools.partial(
        lorentz_linear_kernel,
        c=float(c),
        scale_exp=float(math.exp(scale_param)),
        sqrt_c=float(math.sqrt(c)),
    )
    lin_need = 2 * tm * Dp * 4 + Dp * Dp * 4 + Dp * 4 + 2 * tm * Dp * item
    h1 = pl.pallas_call(
        lin_kernel,
        out_shape=jax.ShapeDtypeStruct((Np, Dp), mm_dtype),
        grid_spec=pltpu.PrefetchScalarGridSpec(
            num_scalar_prefetch=0,
            grid=(n_row,),
            in_specs=[
                pl.BlockSpec((tm, Dp), lambda i: (i, 0)),
                _const_bspec((Dp, Dp), lambda i: (0, 0)),   # weight: single-buffered
                _const_bspec((1, Dp), lambda i: (0, 0)),    # bias:   single-buffered
            ],
            out_specs=pl.BlockSpec((tm, Dp), lambda i: (i, 0)),
        ),
        compiler_params=pltpu.CompilerParams(
            dimension_semantics=("parallel",),
            vmem_limit_bytes=_vmem_limit_bytes(lin_need),
        ),
    )(xp, wp, bp)

    # ---- kernel 2: K-tiled aggregation + skip -------------------------------
    agg_kernel = functools.partial(
        lorentz_agg_skip_kernel,
        sqrt_c=float(math.sqrt(c)),
        inv_sqrt_c=float(1.0 / math.sqrt(c)),
    )
    agg_need = (2 * tm * Dp * 4            # x tiles
                + 2 * tm * tk * item       # adj tiles (dominant HBM stream)
                + 2 * tk * Dp * item       # h1 K-tiles
                + 2 * tm * Dp * 4          # out tiles
                + tm * Dp * 4)             # accumulator scratch
    out_p = pl.pallas_call(
        agg_kernel,
        out_shape=jax.ShapeDtypeStruct((Np, Dp), f32),
        grid_spec=pltpu.PrefetchScalarGridSpec(
            num_scalar_prefetch=0,
            grid=(n_row, n_k),
            in_specs=[
                pl.BlockSpec((tm, Dp), lambda i, k: (i, 0)),   # x row tile (epilogue)
                pl.BlockSpec((tm, tk), lambda i, k: (i, k)),   # adj tile
                pl.BlockSpec((tk, Dp), lambda i, k: (k, 0)),   # h1 K-tile
            ],
            out_specs=pl.BlockSpec((tm, Dp), lambda i, k: (i, 0)),
            scratch_shapes=[pltpu.VMEM((tm, Dp), jnp.float32)],
        ),
        compiler_params=pltpu.CompilerParams(
            dimension_semantics=("parallel", "arbitrary"),
            vmem_limit_bytes=_vmem_limit_bytes(agg_need),
        ),
    )(xp, adjp, h1)

    return out_p[:N, :D_out]


# ---------------------------------------------------------------------------
# Pure-JAX mirror of the PyTorch forward for verification.
# `agg_matmul_dtype` emulates the bf16 aggregation matmul of the fast path.
# ---------------------------------------------------------------------------
def skip_layer_reference(x, adj, w, b, *, c=1.0, scale_param=math.log(10.0),
                         agg_matmul_dtype=None):
    c = jnp.float32(c)
    xa = jax.nn.relu(x)
    h = xa @ w + b
    time = jax.nn.sigmoid(h[:, :1]) * jnp.exp(jnp.float32(scale_param)) + (jnp.sqrt(c) + 0.5)
    xn = h[:, 1:]
    sq = jnp.maximum(jnp.sum(xn * xn, axis=-1, keepdims=True), 1e-8)
    sfac = (time * time - c) / sq
    h1 = jnp.concatenate([time, xn * jnp.sqrt(jnp.maximum(sfac, 1e-8))], axis=-1)
    if agg_matmul_dtype is not None:
        support = jnp.dot(adj.astype(agg_matmul_dtype), h1.astype(agg_matmul_dtype),
                          preferred_element_type=jnp.float32)
    else:
        support = adj @ h1
    inner = -support[:, :1] ** 2 + jnp.sum(support[:, 1:] ** 2, axis=-1, keepdims=True)
    denom = jnp.sqrt(jnp.maximum(jnp.abs(inner), 1e-8)) / jnp.sqrt(c)
    h1a = support / denom
    ave = x + h1a
    inner2 = -ave[:, :1] ** 2 + jnp.sum(ave[:, 1:] ** 2, axis=-1, keepdims=True)
    denom2 = jnp.sqrt(jnp.maximum(jnp.abs(inner2), 1e-8)) * jnp.sqrt(c)
    return ave / denom2


if __name__ == "__main__":
    # NOTE: at these tiny sizes the layer is launch-overhead bound; the kernels
    # are structured for real graph sizes (K-tiled adj contraction, lane-dense
    # features, bf16 MXU path).
    C = 1.0
    SCALE_PARAM = math.log(10.0)   # LorentzLinear.scale init (log(10))

    def make_inputs(key, n, d):
        kx, kadj, kw = jax.random.split(key, 3)
        x = jax.random.normal(kx, (n, d), dtype=jnp.float32)
        adj = jax.random.uniform(kadj, (n, n), dtype=jnp.float32)
        # nn.Linear weight (out,in): uniform(-stdv,stdv), stdv=1/sqrt(out_dim),
        # input column 0 zeroed (LorentzLinear.reset_parameters); bias = 0.
        stdv = 1.0 / math.sqrt(d)
        w_pt = jax.random.uniform(kw, (d, d), minval=-stdv, maxval=stdv,
                                  dtype=jnp.float32)
        w_pt = w_pt.at[:, 0].set(0.0)
        return x, adj, w_pt.T, jnp.zeros((1, d), dtype=jnp.float32)

    key = jax.random.PRNGKey(0)
    key1, key2 = jax.random.split(key)

    # --- case 1: N=64, D=32 -> padded to 128 nodes, multiple row blocks ------
    x, adj, w, b = make_inputs(key1, 64, 32)
    ref = jax.block_until_ready(
        skip_layer_reference(x, adj, w, b, c=C, scale_param=SCALE_PARAM))
    out = jax.block_until_ready(
        skip_layer_forward(x, adj, w, b, c=C, scale_param=SCALE_PARAM,
                           block_rows=32, block_k=128))
    assert out.shape == (64, 32)
    assert bool(jnp.all(jnp.isfinite(out)))
    assert bool(jnp.allclose(out, ref, atol=2e-4, rtol=2e-3)), (
        f"case1 max abs diff {float(jnp.max(jnp.abs(out - ref)))}")

    # --- case 2: N=256, D=32 -> 2 row blocks x 2 K-steps (tests accumulator) --
    x2, adj2, w2, b2 = make_inputs(key2, 256, 32)
    ref2 = jax.block_until_ready(
        skip_layer_reference(x2, adj2, w2, b2, c=C, scale_param=SCALE_PARAM))
    out2 = jax.block_until_ready(
        skip_layer_forward(x2, adj2, w2, b2, c=C, scale_param=SCALE_PARAM,
                           block_rows=128, block_k=128))
    assert out2.shape == (256, 32)
    assert bool(jnp.all(jnp.isfinite(out2)))
    assert bool(jnp.allclose(out2, ref2, atol=5e-4, rtol=5e-3)), (
        f"case2 max abs diff {float(jnp.max(jnp.abs(out2 - ref2)))}")

    # --- case 3: native bf16 MXU aggregation path (both operands bf16) --------
    # Compared against a reference that applies the same bf16 quantization to
    # the aggregation matmul, so the check is tight and deterministic.
    ref_bf16 = jax.block_until_ready(
        skip_layer_reference(x2, adj2, w2, b2, c=C, scale_param=SCALE_PARAM,
                             agg_matmul_dtype=jnp.bfloat16))
    out_bf16 = jax.block_until_ready(
        skip_layer_forward(x2, adj2, w2, b2, c=C, scale_param=SCALE_PARAM,
                           block_rows=128, block_k=128,
                           matmul_dtype=jnp.bfloat16))
    assert bool(jnp.all(jnp.isfinite(out_bf16)))
    assert bool(jnp.allclose(out_bf16, ref_bf16, atol=1e-2, rtol=5e-2)), (
        f"case3 max abs diff {float(jnp.max(jnp.abs(out_bf16 - ref_bf16)))}")

    print("KERNEL_OK")
</pallas_src>

<mosaic_0001>
module attributes {stable_mosaic.version = 11 : i64} {
  func.func @lorentz_linear_kernel(%arg0: i32, %arg1: memref<32x128xf32, #tpu.memory_space<vmem>>, %arg2: memref<128x128xf32, #tpu.memory_space<vmem>>, %arg3: memref<1x128xf32, #tpu.memory_space<vmem>>, %arg4: memref<32x128xf32, #tpu.memory_space<vmem>>) attributes {dimension_semantics = [#tpu.dimension_semantics<parallel>], iteration_bounds = array<i64: 4>, scalar_prefetch = 0 : i64, scratch_operands = 0 : i64, tpu.core_type = #tpu.core_type<tc>, window_params = [{transform_indices = @transform_0, window_bounds = array<i64: 32, 128>}, {pipeline_mode = #tpu.pipeline_mode<synchronous>, transform_indices = @transform_1, window_bounds = array<i64: 128, 128>}, {pipeline_mode = #tpu.pipeline_mode<synchronous>, transform_indices = @transform_2, window_bounds = array<i64: 1, 128>}, {transform_indices = @transform_3, window_bounds = array<i64: 32, 128>}]} {
    %c0 = arith.constant 0 : index
    %c0_0 = arith.constant 0 : index
    %0 = vector.load %arg1[%c0, %c0_0] : memref<32x128xf32, #tpu.memory_space<vmem>>, vector<32x128xf32>
    %c0_1 = arith.constant 0 : index
    %c0_2 = arith.constant 0 : index
    %1 = vector.load %arg2[%c0_1, %c0_2] : memref<128x128xf32, #tpu.memory_space<vmem>>, vector<128x128xf32>
    %c0_3 = arith.constant 0 : index
    %c0_4 = arith.constant 0 : index
    %2 = vector.load %arg3[%c0_3, %c0_4] : memref<1x128xf32, #tpu.memory_space<vmem>>, vector<1x128xf32>
    %cst = arith.constant 0.000000e+00 : f32
    %3 = vector.broadcast %cst : f32 to vector<32x128xf32>
    %4 = arith.maximumf %0, %3 : vector<32x128xf32>
    %cst_5 = arith.constant dense<0.000000e+00> : vector<32x128xf32>
    %5 = tpu.matmul %4, %1, %cst_5 {dimension_numbers = #tpu.dot_dimension_numbers<[1], [0], [0], [1], [0, 0, 1, 1], [], []>} : vector<32x128xf32>, vector<128x128xf32>, vector<32x128xf32> -> vector<32x128xf32>
    %6 = vector.broadcast %2 : vector<1x128xf32> to vector<32x128xf32>
    %7 = arith.addf %5, %6 : vector<32x128xf32>
    %8 = vector.extract_strided_slice %7 {offsets = [0, 0], sizes = [32, 1], strides = [1, 1]} : vector<32x128xf32> to vector<32x1xf32>
    %9 = arith.negf %8 : vector<32x1xf32>
    %10 = math.exp %9 : vector<32x1xf32>
    %cst_6 = arith.constant 1.000000e+00 : f32
    %11 = vector.broadcast %cst_6 : f32 to vector<32x1xf32>
    %12 = arith.addf %11, %10 : vector<32x1xf32>
    %13 = arith.divf %11, %12 : vector<32x1xf32>
    %cst_7 = arith.constant 1.000000e+01 : f32
    %14 = vector.broadcast %cst_7 : f32 to vector<32x1xf32>
    %15 = arith.mulf %13, %14 : vector<32x1xf32>
    %cst_8 = arith.constant 1.500000e+00 : f32
    %16 = vector.broadcast %cst_8 : f32 to vector<32x1xf32>
    %17 = arith.addf %15, %16 : vector<32x1xf32>
    %18 = tpu.iota {dimensions = array<i32: 1>} : vector<32x128xi32>
    %c0_i32 = arith.constant 0 : i32
    %19 = vector.broadcast %c0_i32 : i32 to vector<32x128xi32>
    %20 = arith.cmpi eq, %18, %19 : vector<32x128xi32>
    %cst_9 = arith.constant 0.000000e+00 : f32
    %21 = vector.broadcast %cst_9 : f32 to vector<32x128xf32>
    %22 = arith.select %20, %21, %7 : vector<32x128xi1>, vector<32x128xf32>
    %23 = arith.mulf %22, %22 : vector<32x128xf32>
    %cst_10 = arith.constant dense<0.000000e+00> : vector<32xf32>
    %24 = vector.multi_reduction <add>, %23, %cst_10 [1] : vector<32x128xf32> to vector<32xf32>
    %25 = vector.shape_cast %24 : vector<32xf32> to vector<32x1xf32>
    %cst_11 = arith.constant 9.99999993E-9 : f32
    %26 = vector.broadcast %cst_11 : f32 to vector<32x1xf32>
    %27 = arith.maximumf %25, %26 : vector<32x1xf32>
    %28 = arith.mulf %17, %17 : vector<32x1xf32>
    %cst_12 = arith.constant 1.000000e+00 : f32
    %29 = vector.broadcast %cst_12 : f32 to vector<32x1xf32>
    %30 = arith.subf %28, %29 : vector<32x1xf32>
    %31 = arith.divf %30, %27 : vector<32x1xf32>
    %cst_13 = arith.constant 9.99999993E-9 : f32
    %32 = vector.broadcast %cst_13 : f32 to vector<32x1xf32>
    %33 = arith.maximumf %31, %32 : vector<32x1xf32>
    %34 = math.sqrt %33 : vector<32x1xf32>
    %35 = vector.broadcast %34 : vector<32x1xf32> to vector<32x128xf32>
    %36 = arith.mulf %7, %35 : vector<32x128xf32>
    %37 = vector.shape_cast %17 : vector<32x1xf32> to vector<32x1xf32>
    %38 = vector.broadcast %37 : vector<32x1xf32> to vector<32x128xf32>
    %39 = arith.select %20, %38, %36 : vector<32x128xi1>, vector<32x128xf32>
    %c0_14 = arith.constant 0 : index
    %c0_15 = arith.constant 0 : index
    %40 = vector.load %arg4[%c0_14, %c0_15] : memref<32x128xf32, #tpu.memory_space<vmem>>, vector<32x128xf32>
    tpu.vector_store %arg4[%c0_14, %c0_15], %39 {strides = array<i32>} : memref<32x128xf32, #tpu.memory_space<vmem>>, vector<32x128xf32>,
    return
  }
  func.func @transform_0(%arg0: i32) -> (i32, i32) {
    %c0_i32 = arith.constant 0 : i32
    %c0_i32_0 = arith.constant 0 : i32
    return %arg0, %c0_i32 : i32, i32
  }
  func.func @transform_1(%arg0: i32) -> (i32, i32) {
    %c0_i32 = arith.constant 0 : i32
    %c0_i32_0 = arith.constant 0 : i32
    %c0_i32_1 = arith.constant 0 : i32
    return %c0_i32, %c0_i32_0 : i32, i32
  }
  func.func @transform_2(%arg0: i32) -> (i32, i32) {
    %c0_i32 = arith.constant 0 : i32
    %c0_i32_0 = arith.constant 0 : i32
    %c0_i32_1 = arith.constant 0 : i32
    return %c0_i32, %c0_i32_0 : i32, i32
  }
  func.func @transform_3(%arg0: i32) -> (i32, i32) {
    %c0_i32 = arith.constant 0 : i32
    %c0_i32_0 = arith.constant 0 : i32
    return %arg0, %c0_i32 : i32, i32
  }
}

</mosaic_0001>

<bundles_post_ra>
// kernel: tpu_custom_call.1
= control target key start
LH: loop header
LB: loop body
LE: loop exit
PB: predicated region body
PF: predicated region fallthrough
CT: control target
= control target key end

     0   :  { %8 = vsyncpa [#allocation3], 0  ;;  %s1177_s0 = inlined_call_operand.hbm [shape: f32[128,128], index: 0, kind: input, shape index: {}]   ;;  %s1178_s1 = inlined_call_operand.hbm [shape: f32[128,128], index: 1, kind: input, shape index: {}]   ;;  %s1179_s2 = inlined_call_operand.vmem [shape: f32[1,128], index: 2, kind: input, shape index: {}]   ;;  %s1180_s3 = inlined_call_operand.hbm [shape: f32[128,128], index: 3, kind: output, shape index: {}]  }
   0x1   :  { %10 = vsyncpa [#allocation3 + $0x1], 0 }
   0x2   :  { %11 = vsyncpa [#allocation6], 0 }
   0x3   :  { %12 = vsyncpa [#allocation4], 0 }
   0x4   :  { %14 = vsyncpa [#allocation4 + $0x1], 0  ;;  %s939_s12 = smov 0   ;;  %s941_s13 = smov 0  }
   0x5   :  { %s943_s14 = smov 0   ;;  %s945_s15 = smov 0  }
   0x6 LB: > { %s960_s16 = sadd.s32 4294967295, %s909_s15   ;;  %s574_s17 = sadd.s32 4294967294, %s909_s15   ;;  %s909_s15 = sphi %s945_s15, %s1201_s15   ;;  %s905_s14 = sphi %s943_s14, %s1200_s14   ;;  %s901_s13 = sphi %s941_s13, %s1199_s13   ;;  %s897_s12 = sphi %s939_s12, %s1198_s12  }
   0x7   : > { %p40_p0 = scmp.ne.s32.totalorder %s901_s13, %s897_s12  ;;  %p1181_p1 = scmp.eq.s32.totalorder %s960_s16, 0 }
   0x8   : > { %p112_p3 = scmp.eq.s32.totalorder %s574_s17, 3  ;;  %p575_p5 = scmp.ge.s32.totalorder %s909_s15, 1 }
   0x9   : > { %p969_p4 = por %p1181_p1, %p40_p0  ;;  %p119_p7 = scmp.lt.s32.totalorder %s909_s15, 5 }
   0xa   : > { %p974_p6 = por %p112_p3, %p40_p0  ;;  %s911_s21 = smov [#allocation5]  }
   0xb   : > { %s1185_s18 = scalar_select %p969_p4, 1, 0 }
   0xc   : > { %s1186_s19 = scalar_select %p974_p6, 1, 0 }
   0xd   : > { %p979_p8 = pnand %p575_p5, %p119_p7  ;;  %s131_s22 = sshll.u32 %s911_s21, 4  ;;  %s132_s22 = int_to_ptr.vmem [resolvable:$true] %s131_s22 }
   0xe   : > { %s992_s24 = sadd.s32 1, %s909_s15   ;;  %s27_s25 = sadd.s32 1, %s905_s14 }
   0xf   : > { %s1187_s20 = scalar_select %p979_p8, 1, 0 }
  0x10   : > { %p699_p9 = pneg %p979_p8  ;;  %s24_s26 = ssub.s32 %s909_s15, %s992_s24 }
  0x11   : > { %s798_s27 = scalar_lea.vmem %s132_s22, 2048  ;;  %p806_p3 = scmp.lt.s32.totalorder %s132_s22, %s132_s22 }
  0x12   : > { %p987_p10 = pnand %p699_p9, %p1181_p1  ;;  %p799_p12 = scmp.ne.s32.totalorder %s132_s22, %s798_s27 }
  0x13   : > { %p807_p5 = scmp.lt.s32.totalorder %s798_s27, %s798_s27 }
  0x14   : > { %p789_p11 = pneg %p987_p10 }
  0x15   : > { %p808_p7 = por %p807_p5, %p806_p3 }
  0x16   : > { %p801_p13 = pnand %p799_p12, %p789_p11 }
  0x18   : > { %p802_p0 = pneg %p801_p13 }
  0x1a   : > { %p809_p2 = pnand %p808_p7, %p802_p0 }
  0x1c   : > { %812 = shalt.err (!%p809_p2)
}
  0x1d   : > { %s912_s28 = smov 128   ;;  %s913_s29 = smov 8  }
  0x1e   : > { %702 = dma.hbm_to_vmem [thread:$0]  (!%p987_p10), %s1178_s1, 2048, %s132_s22, [#allocation6], %s912_s28, %s912_s28, %s913_s29  }
  0x1f   : > { %p25_p2 = scmp.eq.s32.totalorder %s24_s26, 0  ;;  %p34_p9 = scmp.ne.s32.totalorder %s905_s14, %s901_s13 }
  0x20   : > { %p35_p11 = scmp.eq.s32.totalorder %s909_s15, 0  ;;  %p712_p12 = scmp.lt.s32.totalorder %s909_s15, 4 }
  0x21   : > { %s1012_s5 = scalar_select %p25_p2, %s905_s14, %s27_s25  }
  0x22   : > { %p36_p13 = por %p35_p11, %p34_p9  ;;  %p1189_p0 = scmp.eq.s32.totalorder %s960_s16, 3 }
  0x23   : > { %s148_s7 = sand.u32 1, %s905_s14   ;;  %s599_s8 = sshll.u32 %s909_s15, 9 }
  0x24   : > { %p1016_p3 = por %p1189_p0, %p34_p9  ;;  %s578_s9 = sshll.u32 %s148_s7, 5 }
  0x25   : > { %s1025_s17 = scalar_lea.hbm %s1177_s0, %s599_s8  ;;  %s152_s21 = scalar_lea.vmem [#allocation2], %s578_s9 }
  0x26   : > { %s1190_s6 = scalar_select %p1016_p3, 1, 0 }
  0x27   : > { %s159_s22 = sshll.u32 %s152_s21, 4  ;;  %p1027_p10 = pnand %p712_p12, %p36_p13  ;;  %s1031_s22 = int_to_ptr.vmem [resolvable:$true] %s159_s22 }
  0x28   : > { %s1033_s25 = scalar_lea.sflag [#allocation3], %s148_s7  ;;  %s813_s26 = scalar_lea.hbm %s1025_s17, 512 }
  0x29   : > { %p814_p5 = scmp.ne.s32.totalorder %s1025_s17, %s813_s26  ;;  %p815_p7 = pneg %p1027_p10 }
  0x2a   : > { %s818_s4 = scalar_lea.hbm %s1177_s0, 2048  ;;  %p819_p11 = scmp.lt.s32.totalorder %s1025_s17, %s1177_s0 }
  0x2b   : > { %p816_p2 = pnand %p815_p7, %p814_p5  ;;  %p820_p12 = scmp.lt.s32.totalorder %s818_s4, %s813_s26 }
  0x2d   : > { %p817_p9 = pneg %p816_p2  ;;  %p821_p13 = por %p820_p12, %p819_p11 }
  0x2f   : > { %p822_p0 = pnand %p821_p13, %p817_p9 }
  0x31   : > { %825 = shalt.err (!%p822_p0)
}
  0x32   : > { %s826_s7 = scalar_lea.vmem %s1031_s22, 512  ;;  %s914_s10 = smov [#allocation2]  }
  0x33   : > { %p827_p1 = scmp.ne.s32.totalorder %s1031_s22, %s826_s7  ;;  %s831_s11 = sshll.u32 %s914_s10, 4  ;;  %s832_s11 = int_to_ptr.vmem [resolvable:$false] %s831_s11 }
  0x34   : > { %s833_s21 = scalar_lea.vmem %s832_s11, 1024  ;;  %p834_p2 = scmp.lt.s32.totalorder %s1031_s22, %s832_s11 }
  0x35   : > { %p829_p6 = pnand %p827_p1, %p815_p7  ;;  %p835_p3 = scmp.lt.s32.totalorder %s833_s21, %s826_s7 }
  0x37   : > { %p830_p5 = pneg %p829_p6  ;;  %p836_p4 = por %p835_p3, %p834_p2 }
  0x39   : > { %p837_p8 = pnand %p836_p4, %p830_p5 }
  0x3b   : > { %840 = shalt.err (!%p837_p8)
}
  0x3c   : > { %706 = dma.hbm_to_vmem [thread:$0]  (!%p1027_p10), %s1025_s17, 512, %s1031_s22, %s1033_s25, %s912_s28, %s912_s28, %s913_s29  }
  0x3d   : > { %p1192_p1 = scmp.ne.s32.totalorder %s1187_s20, 0 }
  0x3e   : > { %s1060_s26 = sand.u32 (!%p1192_p1), 1, %s901_s13   ;;  %p1193_p4 = scmp.ne.s32.totalorder (!%p1192_p1), %s1185_s18, 0 }
  0x3f   : > { %171 = sbr.rel (%p1192_p1) target bundleno = 650 (0x28a), region = 32  ;;  %s582_s27 = sshll.u32 (!%p1192_p1), %s1060_s26, 5 }
  0x40   : > { %s174_s30 = scalar_lea.sflag (!%p1192_p1), [#allocation3], %s1060_s26  ;;  %s1066_s23 = scalar_lea.vmem (!%p1192_p1), [#allocation2], %s582_s27 }
  0x44   : > { %884 = dma.done.wait (%p1193_p4), %s174_s30, 512  }
  0x45   : > { %886 = vsyncadd (%p1193_p4), %s174_s30, 4294966784  ;;  %p1194_p6 = scmp.eq.s32.totalorder %s960_s16, 0 }
  0x47   : > { %888 = dma.done.wait (%p1194_p6), [#allocation6], 2048   ;;  %p1195_p8 = pmov %p1194_p6 }
  0x48   : > { %v225_v0 = vld [vmem:[#allocation5 + $0x78] sm:$0xff]  ;;  %v224_v1 = vld [vmem:[#allocation5 + $0x70] sm:$0xff]  ;;  %v223_v2 = vld [vmem:[#allocation5 + $0x68] sm:$0xff]  ;;  %v354_v24 = vlaneseq  ;;  %v915_v43 = vmov 0   ;;  %s203_s28 = scalar_lea.vmem [#allocation7], %s582_s27  ;;  %s600_s17 = sshll.u32 %s960_s16, 9 }
  0x49   : > { %890 = vsyncadd (%p1195_p8), [#allocation6], 4294965248  ;;  %621 = vmatprep.subr.mxu0 %v225_v0  ;;  %659 = vmatprep.subr.mxu1 %v225_v0  ;;  %v222_v3 = vld [vmem:[#allocation5 + $0x60] sm:$0xff]  ;;  %v221_v4 = vld [vmem:[#allocation5 + $0x58] sm:$0xff]  ;;  %s491_s29 = sshll.u32 %s203_s28, 4  ;;  %s1133_s4 = scalar_lea.hbm %s1180_s3, %s600_s17  ;;  %s1125_s29 = int_to_ptr.vmem [resolvable:$true] %s491_s29 }
  0x4a   : > { %622 = vmatpush3.msra.mxu0 %v225_v0  ;;  %675 = vmatpush3.msra.mxu1 %v225_v0  ;;  %v220_v5 = vld [vmem:[#allocation5 + $0x50] sm:$0xff]  ;;  %v219_v6 = vld [vmem:[#allocation5 + $0x48] sm:$0xff]  ;;  %v218_v7 = vld [vmem:[#allocation5 + $0x40] sm:$0xff]  ;;  %v1080_v27 = vand.u32 127, %v354_v24  ;;  %s478_s16 = scalar_lea.sflag [#allocation4], %s1060_s26  ;;  %s841_s8 = scalar_lea.vmem %s1125_s29, 512 }
  0x4b   : > { %623 = vmatprep.subr.mxu0 %v224_v1  ;;  %660 = vmatprep.subr.mxu1 %v224_v1  ;;  %v217_v8 = vld [vmem:[#allocation5 + $0x38] sm:$0xff]  ;;  %v216_v9 = vld [vmem:[#allocation5 + $0x30] sm:$0xff]  ;;  %v215_v10 = vld [vmem:[#allocation5 + $0x28] sm:$0xff]  ;;  %p842_p3 = scmp.ne.s32.totalorder %s1125_s29, %s841_s8  ;;  %p1196_p10 = scmp.ne.s32.totalorder %s1190_s6, 0 }
  0x4c   : > { %624 = vmatpush3.msra.mxu0 %v224_v1  ;;  %676 = vmatpush3.msra.mxu1 %v224_v1  ;;  %v214_v11 = vld [vmem:[#allocation5 + $0x20] sm:$0xff]  ;;  %v213_v12 = vld [vmem:[#allocation5 + $0x18] sm:$0xff]  ;;  %v212_v13 = vld [vmem:[#allocation5 + $0x10] sm:$0xff]  ;;  %vm356_vm0 = vcmp.eq.s32.totalorder %v1080_v27, 0  ;;  %s916_s9 = smov [#allocation7]  }
  0x4d   : > { %625 = vmatprep.subr.mxu0 %v223_v2  ;;  %661 = vmatprep.subr.mxu1 %v223_v2  ;;  %v211_v14 = vld [vmem:[#allocation5 + $0x8] sm:$0xff]  ;;  %v206_v15 = vld [vmem:[%s1066_s23] sm:$0xff]  ;;  %v208_v16 = vld [vmem:[%s1066_s23 + $0x10] sm:$0xff]  ;;  %p843_p7 = pnand %p842_p3, %p1196_p10  ;;  %s845_s7 = sshll.u32 %s916_s9, 4  ;;  %s846_s7 = int_to_ptr.vmem [resolvable:$false] %s845_s7 }
  0x4e   : > { %626 = vmatpush3.msra.mxu0 %v223_v2  ;;  %677 = vmatpush3.msra.mxu1 %v223_v2  ;;  %v207_v17 = vld [vmem:[%s1066_s23 + $0x8] sm:$0xff]  ;;  %v209_v18 = vld [vmem:[%s1066_s23 + $0x18] sm:$0xff]  ;;  %v210_v19 = vld [vmem:[#allocation5] sm:$0xff]  ;;  %v227_v20 = vmax.f32 %v206_v15, 0.0  ;;  %v229_v21 = vmax.f32 %v208_v16, 0.0  ;;  %s847_s10 = scalar_lea.vmem %s846_s7, 1024  ;;  %p848_p11 = scmp.lt.s32.totalorder %s1125_s29, %s846_s7 }
  0x4f   : > { %627 = vmatprep.subr.mxu0 %v222_v3  ;;  %662 = vmatprep.subr.mxu1 %v222_v3  ;;  %v228_v22 = vmax.f32 %v207_v17, 0.0  ;;  %v230_v23 = vmax.f32 %v209_v18, 0.0  ;;  %v585_v28 = vld [vmem:[%s1179_s2] ss:$0 sm:$0xff]  ;;  %p844_p9 = pneg %p843_p7  ;;  %p849_p12 = scmp.lt.s32.totalorder %s847_s10, %s841_s8 }
  0x50   : > { %628 = vmatpush3.msra.mxu0 %v222_v3  ;;  %678 = vmatpush3.msra.mxu1 %v222_v3 }
  0x51   : > { %629 = vmatprep.subr.mxu0 %v221_v4  ;;  %663 = vmatprep.subr.mxu1 %v221_v4  ;;  %p850_p13 = por %p849_p12, %p848_p11 }
  0x52   : > { %630 = vmatpush3.msra.mxu0 %v221_v4  ;;  %679 = vmatpush3.msra.mxu1 %v221_v4 }
  0x53   : > { %631 = vmatprep.subr.mxu0 %v220_v5  ;;  %664 = vmatprep.subr.mxu1 %v220_v5  ;;  %p851_p0 = pnand %p850_p13, %p844_p9 }
  0x54   : > { %632 = vmatpush3.msra.mxu0 %v220_v5  ;;  %680 = vmatpush3.msra.mxu1 %v220_v5 }
  0x55   : > { %633 = vmatprep.subr.mxu0 %v219_v6  ;;  %665 = vmatprep.subr.mxu1 %v219_v6 }
  0x56   : > { %634 = vmatpush3.msra.mxu0 %v219_v6  ;;  %681 = vmatpush3.msra.mxu1 %v219_v6 }
  0x57   : > { %635 = vmatprep.subr.mxu0 %v218_v7  ;;  %666 = vmatprep.subr.mxu1 %v218_v7 }
  0x58   : > { %636 = vmatpush3.msra.mxu0 %v218_v7  ;;  %682 = vmatpush3.msra.mxu1 %v218_v7 }
  0x59   : > { %637 = vmatprep.subr.mxu0 %v217_v8  ;;  %667 = vmatprep.subr.mxu1 %v217_v8 }
  0x5a   : > { %638 = vmatpush3.msra.mxu0 %v217_v8  ;;  %683 = vmatpush3.msra.mxu1 %v217_v8 }
  0x5b   : > { %639 = vmatprep.subr.mxu0 %v216_v9  ;;  %668 = vmatprep.subr.mxu1 %v216_v9 }
  0x5c   : > { %640 = vmatpush3.msra.mxu0 %v216_v9  ;;  %684 = vmatpush3.msra.mxu1 %v216_v9 }
  0x5d   : > { %641 = vmatprep.subr.mxu0 %v215_v10  ;;  %669 = vmatprep.subr.mxu1 %v215_v10 }
  0x5e   : > { %642 = vmatpush3.msra.mxu0 %v215_v10  ;;  %685 = vmatpush3.msra.mxu1 %v215_v10 }
  0x5f   : > { %643 = vmatprep.subr.mxu0 %v214_v11  ;;  %670 = vmatprep.subr.mxu1 %v214_v11 }
  0x60   : > { %644 = vmatpush3.msra.mxu0 %v214_v11  ;;  %686 = vmatpush3.msra.mxu1 %v214_v11 }
  0x61   : > { %645 = vmatprep.subr.mxu0 %v213_v12  ;;  %671 = vmatprep.subr.mxu1 %v213_v12 }
  0x62   : > { %646 = vmatpush3.msra.mxu0 %v213_v12  ;;  %687 = vmatpush3.msra.mxu1 %v213_v12 }
  0x63   : > { %647 = vmatprep.subr.mxu0 %v212_v13  ;;  %672 = vmatprep.subr.mxu1 %v212_v13 }
  0x64   : > { %648 = vmatpush3.msra.mxu0 %v212_v13  ;;  %688 = vmatpush3.msra.mxu1 %v212_v13 }
  0x65   : > { %649 = vmatprep.subr.mxu0 %v211_v14  ;;  %673 = vmatprep.subr.mxu1 %v211_v14 }
  0x66   : > { %650 = vmatpush3.msra.mxu0 %v211_v14  ;;  %689 = vmatpush3.msra.mxu1 %v211_v14 }
  0x67   : > { %651 = vmatprep.subr.mxu0 %v210_v19  ;;  %674 = vmatprep.subr.mxu1 %v210_v19 }
  0x68   : > { %652 = vmatpush3.msra.mxu0 %v210_v19  ;;  %690 = vmatpush3.msra.mxu1 %v210_v19 }
  0x69   : > { %653 = vmatprep.mubr.f32.mxu0 %v227_v20  ;;  %656 = vmatprep.mubr.f32.mxu1 %v229_v21 }
  0x6a   : > { %654 = vmatmul.mubr.f32.vlgmr.msra.gmra.mxu0 %v228_v22  ;;  %657 = vmatmul.mubr.f32.vlgmr.msra.gmra.mxu1 %v230_v23 }
  0x6b   : > { %753 = vset.pattern.permute.xlu0 %v915_v43  ;;  %754 = vset.pattern.permute.xlu1 %v915_v43 }
 0x12a   : > { %v655_v25 = vpop.f32.mrf.mxu0  ;;  %v658_v26 = vpop.f32.mrf.mxu1 }
 0x12b   : > { %v1085_v31 = vadd.f32 %v658_v26, %v585_v28  ;;  %v1091_v34 = vadd.f32 %v655_v25, %v585_v28 }
 0x12c   : > { %v303_v29 = vpop.f32.mrf.mxu0  ;;  %v313_v30 = vpop.f32.mrf.mxu1 }
 0x12d   : > { %v1087_v32 = vadd.f32 %v585_v28, %v303_v29  ;;  %v1089_v33 = vadd.f32 %v585_v28, %v313_v30  ;;  %v360_v39 = vsel %vm356_vm0, 0.0, %v1085_v31  ;;  %v358_v40 = vsel %vm356_vm0, 0.0, %v1091_v34 }
 0x12e   : > { %v364_v41 = vmul.f32 %v360_v39, %v360_v39  ;;  %v362_v42 = vmul.f32 %v358_v40, %v358_v40  ;;  %v589_v45 = vmul.f32 -1.442695, %v1085_v31  ;;  %v587_v46 = vmul.f32 -1.442695, %v1091_v34 }
 0x12f   : > { %v359_v35 = vsel %vm356_vm0, 0.0, %v1089_v33  ;;  %v357_v37 = vsel %vm356_vm0, 0.0, %v1087_v32  ;;  %v586_v44 = vmul.f32 -1.442695, %v1087_v32  ;;  %v588_v47 = vmul.f32 -1.442695, %v1089_v33 }
 0x130   : > { %v363_v36 = vmul.f32 %v359_v35, %v359_v35  ;;  %v361_v38 = vmul.f32 %v357_v37, %v357_v37 }
 0x131   : > { %755 = vpow2.f32 %v586_v44 }
 0x132   : > { %369 = vadd.xlane.f32.xlu1 %v363_v36  ;;  %365 = vadd.xlane.f32.xlu0 %v361_v38  ;;  %757 = vpow2.f32 %v589_v45 }
 0x133   : > { %759 = vpow2.f32 %v587_v46 }
 0x134   : > { %761 = vpow2.f32 %v588_v47 }
 0x136   : > { %371 = vadd.xlane.f32.xlu1 %v364_v41  ;;  %367 = vadd.xlane.f32.xlu0 %v362_v42 }
 0x13e   : > { %v756_v48 = vpop.eup %755 }
 0x13f   : > { %v758_v49 = vpop.eup %757  ;;  %v334_v50 = vadd.f32 1.0, %v756_v48 }
 0x140   : > { %v760_v51 = vpop.eup %759  ;;  %v337_v52 = vadd.f32 1.0, %v758_v49 }
 0x141   : > { %v335_v53 = vadd.f32 1.0, %v760_v51  ;;  %763 = vrcp.f32 %v334_v50  ;;  %v762_v54 = vpop.eup %761 }
 0x142   : > { %765 = vrcp.f32 %v337_v52  ;;  %v336_v55 = vadd.f32 1.0, %v762_v54 }
 0x143   : > { %767 = vrcp.f32 %v335_v53 }
 0x144   : > { %769 = vrcp.f32 %v336_v55 }
 0x14e   : > { %v764_v57 = vpop.eup %763 }
 0x14f   : > { %v766_v60 = vpop.eup %765  ;;  %v346_v61 = vmul.f32 10.0, %v764_v57 }
 0x150   : > { %v768_v63 = vpop.eup %767  ;;  %v349_v3 = vmul.f32 10.0, %v766_v60 }
 0x151   : > { %v347_v4 = vmul.f32 10.0, %v768_v63  ;;  %v350_v5 = vadd.f32 1.5, %v346_v61  ;;  %v770_v10 = vpop.eup %769 }
 0x152   : > { %v1110_v6 = vadd.f32 1.5, %v349_v3  ;;  %v348_v16 = vmul.f32 10.0, %v770_v10 }
 0x153   : > { %v351_v7 = vadd.f32 1.5, %v347_v4  ;;  %v377_v8 = vmul.f32 %v350_v5, %v350_v5 }
 0x154   : > { %v380_v11 = vmul.f32 %v1110_v6, %v1110_v6  ;;  %v352_v24 = vadd.f32 1.5, %v348_v16 }
 0x155   : > { %v378_v12 = vmul.f32 %v351_v7, %v351_v7  ;;  %v590_v13 = vadd.f32 -1.0, %v377_v8 }
 0x156   : > { %v593_v17 = vadd.f32 -1.0, %v380_v11  ;;  %v379_v28 = vmul.f32 %v352_v24, %v352_v24 }
 0x157   : > { %v591_v19 = vadd.f32 -1.0, %v378_v12 }
 0x158   : > { %v592_v30 = vadd.f32 -1.0, %v379_v28 }
 0x1bb   : > { %v370_v56 = vpop.xlane.xlu1 %369  ;;  %v366_v58 = vpop.xlane.xlu0 %365 }
 0x1bc   : > { %v373_v59 = vmax.f32 %v366_v58, 1e-08  ;;  %v375_v9 = vmax.f32 %v370_v56, 1e-08 }
 0x1be   : > { %771 = vrcp.f32 %v373_v59 }
 0x1bf   : > { %v372_v62 = vpop.xlane.xlu1 %371  ;;  %v368_v1 = vpop.xlane.xlu0 %367 }
 0x1c0   : > { %v376_v0 = vmax.f32 %v372_v62, 1e-08  ;;  %v374_v2 = vmax.f32 %v368_v1, 1e-08 }
 0x1c2   : > { %773 = vrcp.f32 %v376_v0 }
 0x1c3   : > { %775 = vrcp.f32 %v374_v2 }
 0x1c4   : > { %777 = vrcp.f32 %v375_v9 }
 0x1cb   : > { %v772_v14 = vpop.eup %771 }
 0x1cc   : > { %v386_v15 = vmul.f32 %v772_v14, %v590_v13 }
 0x1ce   : > { %v393_v20 = vmax.f32 %v386_v15, 1e-08 }
 0x1cf   : > { %v774_v18 = vpop.eup %773 }
 0x1d0   : > { %v776_v21 = vpop.eup %775  ;;  %v392_v22 = vmul.f32 %v774_v18, %v593_v17  ;;  %779 = vrsqrt.f32 %v393_v20  ;;  %vm399_vm1 = vcmp.eq.f32.partialorder %v393_v20, inf  ;;  %v402_v39 = vand.u32 2147483648, %v393_v20 }
 0x1d1   : > { %v388_v23 = vmul.f32 %v776_v21, %v591_v19  ;;  %v778_v29 = vpop.eup %777  ;;  %vm401_vm2 = vcmp.eq.f32.partialorder %v393_v20, 0.0 }
 0x1d2   : > { %v396_v25 = vmax.f32 %v392_v22, 1e-08  ;;  %v390_v35 = vmul.f32 %v778_v29, %v592_v30 }
 0x1d3   : > { %v394_v26 = vmax.f32 %v388_v23, 1e-08 }
 0x1d4   : > { %781 = vrsqrt.f32 %v396_v25  ;;  %v395_v38 = vmax.f32 %v390_v35, 1e-08  ;;  %vm420_vm5 = vcmp.eq.f32.partialorder %v396_v25, inf  ;;  %v423_v50 = vand.u32 2147483648, %v396_v25 }
 0x1d5   : > { %783 = vrsqrt.f32 %v394_v26  ;;  %vm406_vm3 = vcmp.eq.f32.partialorder %v394_v26, inf  ;;  %v409_v46 = vand.u32 2147483648, %v394_v26  ;;  %vm408_vm4 = vcmp.eq.f32.partialorder %v394_v26, 0.0 }
 0x1d6   : > { %785 = vrsqrt.f32 %v395_v38  ;;  %vm422_vm6 = vcmp.eq.f32.partialorder %v396_v25, 0.0  ;;  %vm413_vm7 = vcmp.eq.f32.partialorder %v395_v38, inf  ;;  %v416_v55 = vand.u32 2147483648, %v395_v38 }
 0x1d7   : > { %vm415_vm8 = vcmp.eq.f32.partialorder %v395_v38, 0.0 }
 0x1dd   : > { %v780_v36 = vpop.eup %779 }
 0x1de   : > { %v398_v37 = vmul.f32 %v780_v36, %v393_v20 }
 0x1e0   : > { %v400_v41 = vsel %vm399_vm1, %v393_v20, %v398_v37 }
 0x1e1   : > { %v782_v40 = vpop.eup %781  ;;  %v403_v43 = vsel %vm401_vm2, %v402_v39, %v400_v41 }
 0x1e2   : > { %v784_v42 = vpop.eup %783  ;;  %427 = vperm.xlu0 %753, %v403_v43   ;;  %v419_v45 = vmul.f32 %v782_v40, %v396_v25 }
 0x1e3   : > { %v405_v44 = vmul.f32 %v784_v42, %v394_v26  ;;  %v786_v52 = vpop.eup %785 }
 0x1e4   : > { %v421_v49 = vsel %vm420_vm5, %v396_v25, %v419_v45  ;;  %v412_v53 = vmul.f32 %v786_v52, %v395_v38 }
 0x1e5   : > { %v407_v47 = vsel %vm406_vm3, %v394_v26, %v405_v44  ;;  %v424_v51 = vsel %vm422_vm6, %v423_v50, %v421_v49 }
 0x1e6   : > { %v410_v48 = vsel %vm408_vm4, %v409_v46, %v407_v47  ;;  %v414_v54 = vsel %vm413_vm7, %v395_v38, %v412_v53 }
 0x1e7   : > { %432 = vperm.xlu1 %754, %v410_v48   ;;  %v417_v56 = vsel %vm415_vm8, %v416_v55, %v414_v54 }
 0x1eb   : > { %442 = vperm.xlu1 %754, %v424_v51  }
 0x1ef   : > { %451 = vperm.xlu1 %754, %v350_v5  }
 0x1f3   : > { %456 = vperm.xlu1 %754, %v351_v7  }
 0x1f7   : > { %461 = vperm.xlu1 %754, %v352_v24  }
 0x1fb   : > { %437 = vperm.xlu1 %754, %v417_v56  }
 0x1ff   : > { %466 = vperm.xlu1 %754, %v1110_v6  }
 0x25d   : > { %v428_v58 = vpop.permute.xlu0 %427 }
 0x25e   : > { %v445_v60 = vmul.f32 %v428_v58, %v1087_v32 }
 0x262   : > { %v433_v57 = vpop.permute.xlu1 %432 }
 0x263   : > { %v446_v63 = vmul.f32 %v433_v57, %v1091_v34 }
 0x266   : > { %v443_v59 = vpop.permute.xlu1 %442 }
 0x267   : > { %v448_v4 = vmul.f32 %v443_v59, %v1085_v31 }
 0x26a   : > { %v452_v61 = vpop.permute.xlu1 %451 }
 0x26b   : > { %v469_v62 = vsel %vm356_vm0, %v452_v61, %v445_v60 }
 0x26c   : > { %473 = vst [vmem:[%s203_s28] sm:$0xff] %v469_v62 }
 0x26e   : > { %v457_v0 = vpop.permute.xlu1 %456 }
 0x26f   : > { %v470_v1 = vsel %vm356_vm0, %v457_v0, %v446_v63 }
 0x270   : > { %474 = vst [vmem:[%s203_s28 + $0x8] sm:$0xff] %v470_v1 }
 0x272   : > { %v462_v2 = vpop.permute.xlu1 %461 }
 0x276   : > { %v438_v3 = vpop.permute.xlu1 %437 }
 0x277   : > { %v447_v32 = vmul.f32 %v438_v3, %v1089_v33 }
 0x279   : > { %v471_v34 = vsel %vm356_vm0, %v462_v2, %v447_v32 }
 0x27a   : > { %475 = vst [vmem:[%s203_s28 + $0x10] sm:$0xff] %v471_v34  ;;  %v467_v5 = vpop.permute.xlu1 %466 }
 0x27b   : > { %v472_v33 = vsel %vm356_vm0, %v467_v5, %v448_v4 }
 0x27c   : > { %476 = vst [vmem:[%s203_s28 + $0x18] sm:$0xff] %v472_v33 }
 0x27d   : > { %854 = shalt.err (!%p851_p0)
}
 0x27e   : > { %s855_s11 = scalar_lea.hbm %s1133_s4, 512  ;;  %s859_s30 = scalar_lea.hbm %s1180_s3, 2048 }
 0x27f   : > { %p856_p5 = scmp.ne.s32.totalorder %s1133_s4, %s855_s11  ;;  %p860_p4 = scmp.lt.s32.totalorder %s1133_s4, %s1180_s3 }
 0x280   : > { %p861_p6 = scmp.lt.s32.totalorder %s859_s30, %s855_s11 }
 0x281   : > { %p857_p2 = pnand %p856_p5, %p1196_p10 }
 0x282   : > { %p862_p8 = por %p861_p6, %p860_p4 }
 0x283   : > { %p858_p1 = pneg %p857_p2 }
 0x285   : > { %p863_p3 = pnand %p862_p8, %p858_p1 }
 0x287   : > { %866 = shalt.err (!%p863_p3)
}
 0x288   : > { %s917_s20 = smov 128   ;;  %s918_s28 = smov 8  }
 0x289   : > { %697 = dma.vmem_to_hbm [thread:$0]  (%p1196_p10), %s1125_s29, 512, %s1133_s4, %s478_s16, %s917_s20, %s917_s20, %s918_s28  }
 0x28a PF: > { %p714_p7 = scmp.ge.s32.totalorder %s909_s15, 2  ;;  %s506_s17 = sand.u32 1, %s897_s12  }
 0x28b   : > { %p1197_p9 = scmp.ne.s32.totalorder %s1186_s19, 0  ;;  %s507_s22 = scalar_lea.sflag [#allocation4], %s506_s17 }
 0x28d   : > { %p708_p11 = pnand %p714_p7, %p1197_p9 }
 0x28f   : > { %p709_p12 = pneg %p708_p11 }
 0x291   : > { %892 = dma.done.wait (%p709_p12), %s507_s22, 512  }
 0x292   : > { %894 = vsyncadd (%p709_p12), %s507_s22, 4294966784  ;;  %p17_p13 = scmp.ge.s32.totalorder %s992_s24, 6   ;;  %s1198_s12 = smov %s901_s13 }
 0x293   : > { %s1199_s13 = smov %s905_s14  ;;  %s1200_s14 = smov %s1012_s5 }
 0x294   : > { %s1201_s15 = smov %s992_s24  ;;  %19 = sbr.rel (!%p17_p13) target bundleno = 6 (0x6), region = 81 }
 0x299   :  { %512 = vsyncpa [#allocation3], 1 }
 0x29a   :  { %514 = vsyncpa [#allocation3 + $0x1], 1 }
 0x29b   :  { %515 = vsyncpa [#allocation6], 1 }
 0x29c   :  { %516 = vsyncpa [#allocation4], 1 }
 0x29d   :  { %518 = vsyncpa [#allocation4 + $0x1], 1 }

</bundles_post_ra>
